<compile_context>
chip_gen: v5e
topology: v5e:2x2
jax: 0.10.0
libtpu: 0.0.40
codegen_flags: <defaults>
</compile_context>

<pallas_src>
import jax
import jax.numpy as jnp
from jax.experimental import pallas as pl
from jax.experimental.pallas import tpu as pltpu


def _gemm_bias_relu_kernel(w_ref, x_ref, b_ref, o_ref):
    """One M row-tile per grid step.

    w_ref : (O, K)   bf16 flattened conv weights (K ordered (kh, kw, c))
    x_ref : (K, TM)  bf16 im2col patches, TM output pixels on the lane axis
    b_ref : (O, 1)   f32 bias
    o_ref : (O, TM)  f32 output tile (lane-dense)
    """
    acc = jnp.dot(w_ref[...], x_ref[...], preferred_element_type=jnp.float32)
    o_ref[...] = jnp.maximum(acc + b_ref[...], 0.0).astype(o_ref.dtype)


def conv2d_block_forward(x_nchw, weight_oihw, bias, *, stride=1, padding=0,
                         row_tile=256, compute_dtype=jnp.bfloat16):
    """Equivalent of Conv2dBlock.forward: relu(conv2d(x, w, b))."""
    N, C, H, W = x_nchw.shape
    O, Cw, KH, KW = weight_oihw.shape
    assert C == Cw
    Ho = (H + 2 * padding - KH) // stride + 1
    Wo = (W + 2 * padding - KW) // stride + 1

    # ---- wrapper-side layout plumbing (no arithmetic) -----------------------
    xp = jnp.pad(x_nchw, ((0, 0), (0, 0), (padding, padding), (padding, padding)))
    # im2col, transposed: patches_T[(kh,kw,c), (n,ho,wo)]
    taps = []
    for kh in range(KH):
        for kw in range(KW):
            taps.append(xp[:, :,
                           kh:kh + (Ho - 1) * stride + 1:stride,
                           kw:kw + (Wo - 1) * stride + 1:stride])   # (N, C, Ho, Wo)
    patches = jnp.stack(taps, axis=0)                # (KH*KW, N, C, Ho, Wo)
    patches = patches.transpose(0, 2, 1, 3, 4)       # (KH*KW, C, N, Ho, Wo)
    Kdim = KH * KW * C
    M = N * Ho * Wo
    patches = patches.reshape(Kdim, M)

    # Pad M up to a multiple of the row tile (lane axis must be 128-aligned).
    tm = row_tile
    assert tm % 128 == 0
    m_pad = ((M + tm - 1) // tm) * tm
    if m_pad != M:
        patches = jnp.pad(patches, ((0, 0), (0, m_pad - M)))

    patches = patches.astype(compute_dtype)
    # (O, C, KH, KW) -> (O, KH, KW, C) -> (O, KH*KW*C); K order matches patches.
    w_t = weight_oihw.transpose(0, 2, 3, 1).reshape(O, Kdim).astype(compute_dtype)
    b_t = bias.reshape(O, 1).astype(jnp.float32)

    # ---- Pallas call: grid over M row-tiles, weights/bias stay resident -----
    grid = (m_pad // tm,)
    out_t = pl.pallas_call(
        _gemm_bias_relu_kernel,
        out_shape=jax.ShapeDtypeStruct((O, m_pad), jnp.float32),
        grid=grid,
        in_specs=[
            pl.BlockSpec((O, Kdim), lambda m: (0, 0)),   # weights (constant block)
            pl.BlockSpec((Kdim, tm), lambda m: (0, m)),  # patches, lane-dense
            pl.BlockSpec((O, 1), lambda m: (0, 0)),      # bias (constant block)
        ],
        out_specs=pl.BlockSpec((O, tm), lambda m: (0, m)),  # lane-dense output
        compiler_params=pltpu.CompilerParams(
            dimension_semantics=("parallel",),
            vmem_limit_bytes=32 * 1024 * 1024,
        ),
    )(w_t, patches, b_t)

    # (O, M) -> (N, O, Ho, Wo)
    out = out_t[:, :M].reshape(O, N, Ho, Wo).transpose(1, 0, 2, 3)
    return out.astype(x_nchw.dtype)


def _xla_reference(x, weight, bias, stride, padding):
    ref = jax.lax.conv_general_dilated(
        x, weight, (stride, stride),
        [(padding, padding), (padding, padding)],
        dimension_numbers=("NCHW", "OIHW", "NCHW"))
    return jnp.maximum(ref + bias[None, :, None, None], 0.0)


if __name__ == "__main__":
    # Module config: Conv2dBlock(in_channels=4, out_channels=8, kernel_size=3,
    #                            stride=1, padding=1)
    N, C, H, W = 2, 4, 16, 16
    O, K = 8, 3

    key = jax.random.PRNGKey(0)
    kx, kw = jax.random.split(key)

    x = jax.random.normal(kx, (N, C, H, W), jnp.float32)

    # Deterministic kaiming_uniform_(nonlinearity='relu'):
    # gain = sqrt(2), fan_in = C*K*K, bound = sqrt(6/fan_in)
    fan_in = C * K * K
    bound = (6.0 / fan_in) ** 0.5
    weight = jax.random.uniform(kw, (O, C, K, K), jnp.float32, -bound, bound)
    bias = jnp.zeros((O,), jnp.float32)   # nn.init.zeros_(m.bias)

    # Main check: stride=1, padding=1 (the Conv2dBlock config under test).
    out = conv2d_block_forward(x, weight, bias, stride=1, padding=1)
    out = jax.block_until_ready(out)
    ref = _xla_reference(x, weight, bias, 1, 1)
    assert out.shape == (N, O, H, W)
    # bf16 MXU operands with f32 accumulation -> loose-ish tolerance vs f32 ref.
    assert jnp.allclose(out, ref, atol=5e-2, rtol=5e-2), float(jnp.max(jnp.abs(out - ref)))

    # Extra check for the strided path flagged in review (stride=2).
    out2 = conv2d_block_forward(x, weight, bias, stride=2, padding=1)
    out2 = jax.block_until_ready(out2)
    ref2 = _xla_reference(x, weight, bias, 2, 1)
    assert out2.shape == ref2.shape
    assert jnp.allclose(out2, ref2, atol=5e-2, rtol=5e-2), float(jnp.max(jnp.abs(out2 - ref2)))

    print("KERNEL_OK")
</pallas_src>

<mosaic_0001>
module attributes {stable_mosaic.version = 11 : i64} {
  func.func @_gemm_bias_relu_kernel(%arg0: i32, %arg1: memref<8x36xbf16, #tpu.memory_space<vmem>>, %arg2: memref<36x256xbf16, #tpu.memory_space<vmem>>, %arg3: memref<8x1xf32, #tpu.memory_space<vmem>>, %arg4: memref<8x256xf32, #tpu.memory_space<vmem>>) attributes {dimension_semantics = [#tpu.dimension_semantics<parallel>], iteration_bounds = array<i64: 2>, scalar_prefetch = 0 : i64, scratch_operands = 0 : i64, tpu.core_type = #tpu.core_type<tc>, window_params = [{pipeline_mode = #tpu.pipeline_mode<synchronous>, transform_indices = @transform_0, window_bounds = array<i64: 8, 36>}, {transform_indices = @transform_1, window_bounds = array<i64: 36, 256>}, {pipeline_mode = #tpu.pipeline_mode<synchronous>, transform_indices = @transform_2, window_bounds = array<i64: 8, 1>}, {transform_indices = @transform_3, window_bounds = array<i64: 8, 256>}]} {
    %c0 = arith.constant 0 : index
    %c0_0 = arith.constant 0 : index
    %0 = vector.load %arg1[%c0, %c0_0] : memref<8x36xbf16, #tpu.memory_space<vmem>>, vector<8x36xbf16>
    %c0_1 = arith.constant 0 : index
    %c0_2 = arith.constant 0 : index
    %1 = vector.load %arg2[%c0_1, %c0_2] : memref<36x256xbf16, #tpu.memory_space<vmem>>, vector<36x256xbf16>
    %cst = arith.constant dense<0.000000e+00> : vector<8x256xf32>
    %2 = tpu.matmul %0, %1, %cst {dimension_numbers = #tpu.dot_dimension_numbers<[1], [0], [0], [1], [0, 0, 1, 1], [], []>} : vector<8x36xbf16>, vector<36x256xbf16>, vector<8x256xf32> -> vector<8x256xf32>
    %c0_3 = arith.constant 0 : index
    %c0_4 = arith.constant 0 : index
    %3 = vector.load %arg3[%c0_3, %c0_4] : memref<8x1xf32, #tpu.memory_space<vmem>>, vector<8x1xf32>
    %4 = vector.broadcast %3 : vector<8x1xf32> to vector<8x256xf32>
    %5 = arith.addf %2, %4 : vector<8x256xf32>
    %cst_5 = arith.constant 0.000000e+00 : f32
    %6 = vector.broadcast %cst_5 : f32 to vector<8x256xf32>
    %7 = arith.maximumf %5, %6 : vector<8x256xf32>
    %c0_6 = arith.constant 0 : index
    %c0_7 = arith.constant 0 : index
    %8 = vector.load %arg4[%c0_6, %c0_7] : memref<8x256xf32, #tpu.memory_space<vmem>>, vector<8x256xf32>
    tpu.vector_store %arg4[%c0_6, %c0_7], %7 {strides = array<i32>} : memref<8x256xf32, #tpu.memory_space<vmem>>, vector<8x256xf32>,
    return
  }
  func.func @transform_0(%arg0: i32) -> (i32, i32) {
    %c0_i32 = arith.constant 0 : i32
    %c0_i32_0 = arith.constant 0 : i32
    %c0_i32_1 = arith.constant 0 : i32
    return %c0_i32, %c0_i32_0 : i32, i32
  }
  func.func @transform_1(%arg0: i32) -> (i32, i32) {
    %c0_i32 = arith.constant 0 : i32
    %c0_i32_0 = arith.constant 0 : i32
    return %c0_i32, %arg0 : i32, i32
  }
  func.func @transform_2(%arg0: i32) -> (i32, i32) {
    %c0_i32 = arith.constant 0 : i32
    %c0_i32_0 = arith.constant 0 : i32
    %c0_i32_1 = arith.constant 0 : i32
    return %c0_i32, %c0_i32_0 : i32, i32
  }
  func.func @transform_3(%arg0: i32) -> (i32, i32) {
    %c0_i32 = arith.constant 0 : i32
    %c0_i32_0 = arith.constant 0 : i32
    return %c0_i32, %arg0 : i32, i32
  }
}

</mosaic_0001>

<bundles_post_ra>
// kernel: tpu_custom_call.1
= control target key start
LH: loop header
LB: loop body
LE: loop exit
PB: predicated region body
PF: predicated region fallthrough
CT: control target
= control target key end

     0   :  { %8 = vsyncpa [#allocation3], 0  ;;  %s696_s0 = inlined_call_operand.vmem [shape: bf16[8,36], index: 0, kind: input, shape index: {}]   ;;  %s697_s1 = inlined_call_operand.hbm [shape: bf16[36,512], index: 1, kind: input, shape index: {}]   ;;  %s698_s2 = inlined_call_operand.vmem [shape: f32[8,1], index: 2, kind: input, shape index: {}]   ;;  %s699_s3 = inlined_call_operand.hbm [shape: f32[8,512], index: 3, kind: output, shape index: {}]  }
   0x1   :  { %10 = vsyncpa [#allocation3 + $0x1], 0 }
   0x2   :  { %11 = vsyncpa [#allocation4], 0 }
   0x3   :  { %13 = vsyncpa [#allocation4 + $0x1], 0  ;;  %s570_s12 = smov 0   ;;  %s572_s13 = smov 0  }
   0x4   :  { %s574_s14 = smov 0   ;;  %s576_s15 = smov 0  }
   0x5 LB: > { %s591_s16 = sadd.s32 4294967295, %s544_s15   ;;  %s359_s17 = sadd.s32 4294967294, %s544_s15   ;;  %s544_s15 = sphi %s576_s15, %s707_s15   ;;  %s540_s14 = sphi %s574_s14, %s706_s14   ;;  %s536_s13 = sphi %s572_s13, %s705_s13   ;;  %s532_s12 = sphi %s570_s12, %s704_s12  }
   0x6   : > { %s595_s18 = sadd.s32 1, %s544_s15   ;;  %s47_s19 = sadd.s32 1, %s540_s14 }
   0x7   : > { %s44_s20 = ssub.s32 %s544_s15, %s595_s18  ;;  %p54_p0 = scmp.ne.s32.totalorder %s540_s14, %s536_s13 }
   0x8   : > { %p45_p1 = scmp.eq.s32.totalorder %s44_s20, 0  ;;  %p55_p2 = scmp.eq.s32.totalorder %s544_s15, 0 }
   0x9   : > { %p60_p3 = scmp.ne.s32.totalorder %s536_s13, %s532_s12  ;;  %p61_p4 = scmp.eq.s32.totalorder %s591_s16, 0 }
   0xa   : > { %s607_s21 = scalar_select %p45_p1, %s540_s14, %s47_s19  }
   0xb   : > { %p56_p5 = por %p55_p2, %p54_p0  ;;  %p609_p6 = por %p61_p4, %p60_p3 }
   0xc   : > { %p105_p7 = scmp.eq.s32.totalorder %s591_s16, 1  ;;  %p111_p8 = scmp.eq.s32.totalorder %s359_s17, 1 }
   0xd   : > { %p361_p9 = scmp.ge.s32.totalorder %s544_s15, 2  ;;  %p409_p10 = scmp.lt.s32.totalorder %s544_s15, 2 }
   0xe   : > { %p616_p11 = por %p105_p7, %p54_p0  ;;  %p620_p12 = por %p111_p8, %p60_p3 }
   0xf   : > { %s137_s25 = sand.u32 1, %s540_s14   ;;  %s389_s26 = sshll.u32 %s544_s15, 3 }
  0x10   : > { %s395_s27 = smul.u32 40, %s137_s25  ;;  %s146_s30 = scalar_lea.hbm %s697_s1, %s389_s26 }
  0x11   : > { %p629_p13 = pnand %p409_p10, %p56_p5  ;;  %s147_s5 = sshll.u32 %s146_s30, 4  ;;  %s148_s5 = int_to_ptr.hbm [resolvable:$true] %s147_s5 }
  0x12   : > { %s141_s6 = scalar_lea.vmem [#allocation2], %s395_s27  ;;  %p364_p0 = scmp.ge.s32.totalorder %s544_s15, 1 }
  0x13   : > { %s149_s7 = sshll.u32 %s141_s6, 4  ;;  %s138_s8 = scalar_lea.sflag [#allocation3], %s137_s25  ;;  %s150_s7 = int_to_ptr.vmem [resolvable:$true] %s149_s7 }
  0x14   : > { %s448_s9 = sshra.s32 %s148_s5, 4  ;;  %p452_p2 = pneg %p629_p13  ;;  %s449_s9 = int_to_ptr.hbm [resolvable:$true] %s448_s9 }
  0x15   : > { %s450_s10 = scalar_lea.hbm %s449_s9, 40  ;;  %s455_s19 = scalar_lea.hbm %s697_s1, 80 }
  0x16   : > { %p451_p1 = scmp.ne.s32.totalorder %s449_s9, %s450_s10  ;;  %p456_p5 = scmp.lt.s32.totalorder %s449_s9, %s697_s1 }
  0x17   : > { %p457_p7 = scmp.lt.s32.totalorder %s455_s19, %s450_s10 }
  0x18   : > { %p453_p3 = pnand %p452_p2, %p451_p1 }
  0x19   : > { %p458_p8 = por %p457_p7, %p456_p5 }
  0x1a   : > { %p454_p4 = pneg %p453_p3 }
  0x1c   : > { %p459_p10 = pnand %p458_p8, %p454_p4 }
  0x1e   : > { %462 = shalt.err (!%p459_p10)
}
  0x1f   : > { %s546_s25 = smov 256   ;;  %s547_s27 = smov 128  }
  0x20   : > { %s548_s28 = smov 8   ;;  %p157_p1 = scmp.lt.s32.totalorder %s544_s15, 3 }
  0x21   : > { %404 = dma.hbm_to_vmem [thread:$0]  (!%p629_p13), %s148_s5, 640, %s150_s7, %s138_s8, %s546_s25, %s547_s27, %s548_s28  }
  0x22   : > { %p158_p2 = pnand %p364_p0, %p157_p1 }
  0x23   : > { %s648_s29 = sand.u32 (!%p158_p2), 1, %s536_s13  }
  0x24   : > { %161 = sbr.rel (%p158_p2) target bundleno = 193 (0xc1), region = 32  ;;  %s164_s6 = scalar_lea.sflag (!%p158_p2), [#allocation3], %s648_s29 }
  0x25   : > { %s396_s30 = smul.u32 (!%p158_p2), 40, %s648_s29 }
  0x27   : > { %s167_s9 = scalar_lea.vmem (!%p158_p2), [#allocation2], %s396_s30 }
  0x29   : > { %523 = dma.done.wait (%p609_p6), %s164_s6, 640  }
  0x2a   : > { %525 = vsyncadd (%p609_p6), %s164_s6, 4294966656  ;;  %v549_v0 = vmov 0   ;;  %v199_v1 = vld [vmem:[%s167_s9 + $0x20] sm:$0x33]  ;;  %vm235_vm0 = vcmask 1041408   ;;  %vm231_vm1 = vcmask 293888  }
  0x2b   : > { %447 = vset.pattern.permute.xlu0 %v549_v0  ;;  %v219_v2 = vunpack.c.l.b16 %v199_v1  ;;  %v220_v3 = vunpack.c.h.b16 %v199_v1  ;;  %v376_v4 = vld [vmem:[%s167_s9 + $0x10] sm:$0xf]  ;;  %v393_v5 = vld [vmem:[%s167_s9 + $0x14] sm:$0xf0]  ;;  %v392_v8 = vld [vmem:[%s167_s9 + $0x14] sm:$0xf] }
  0x2c   : > { %v378_v9 = vld [vmem:[%s167_s9 + $0x18] sm:$0xf0]  ;;  %v377_v13 = vor.u32 %v393_v5, %v376_v4  ;;  %v368_v15 = vld [vmem:[%s167_s9] sm:$0xf]  ;;  %v391_v16 = vld [vmem:[%s167_s9 + $0x4] sm:$0xf0] }
  0x2d   : > { %v225_v6 = vpack.c.b16 %v219_v2, %v219_v2  ;;  %v226_v7 = vpack.c.b16 %v220_v3, %v220_v3  ;;  %v200_v10 = vld [vmem:[%s698_s2] sm:$0xff]  ;;  %v381_v14 = vor.u32 %v392_v8, %v378_v9  ;;  %v370_v18 = vld [vmem:[%s167_s9 + $0x8] sm:$0xf0]  ;;  %v369_v19 = vor.u32 %v391_v16, %v368_v15  ;;  %s365_s8 = sshll.u32 %s648_s29, 4  ;;  %s394_s10 = sshll.u32 %s591_s16, 4 }
  0x2e   : > { %203 = vperm.xlu0 %447, %v200_v10   ;;  %v390_v17 = vld [vmem:[%s167_s9 + $0x4] sm:$0xf]  ;;  %v194_v21 = vld [vmem:[%s696_s0] sm:$0xf]  ;;  %s284_s19 = scalar_lea.hbm %s699_s3, %s394_s10  ;;  %s190_s20 = scalar_lea.vmem [#allocation5], %s365_s8 }
  0x2f   : > { %v237_v11 = vsel %vm235_vm0, %v225_v6, 0  ;;  %v240_v12 = vsel %vm235_vm0, %v226_v7, 0  ;;  %v373_v20 = vor.u32 %v390_v17, %v370_v18  ;;  %s286_s26 = sshll.u32 %s190_s20, 4  ;;  %s288_s25 = sshll.u32 %s284_s19, 4  ;;  %s287_s26 = int_to_ptr.vmem [resolvable:$true] %s286_s26  ;;  %s289_s25 = int_to_ptr.hbm [resolvable:$true] %s288_s25 }
  0x30   : > { %247 = vmatpush.bf16.msra.mxu0 %v237_v11  ;;  %260 = vmatpush.bf16.msra.mxu1 %v240_v12  ;;  %s273_s16 = scalar_lea.sflag [#allocation4], %s648_s29  ;;  %s492_s27 = sshra.s32 %s289_s25, 4  ;;  %s493_s27 = int_to_ptr.hbm [resolvable:$true] %s492_s27 }
  0x31   : > { %s494_s28 = scalar_lea.hbm %s493_s27, 16  ;;  %s498_s9 = scalar_lea.hbm %s699_s3, 32 }
  0x32   : > { %p495_p6 = scmp.ne.s32.totalorder %s493_s27, %s494_s28  ;;  %p499_p3 = scmp.lt.s32.totalorder %s493_s27, %s699_s3 }
  0x33   : > { %p500_p4 = scmp.lt.s32.totalorder %s498_s9, %s494_s28 }
  0x34   : > { %248 = vmatpush.bf16.msra.mxu0 %v377_v13  ;;  %261 = vmatpush.bf16.msra.mxu1 %v381_v14  ;;  %p496_p13 = pnand %p495_p6, %p616_p11 }
  0x35   : > { %p501_p5 = por %p500_p4, %p499_p3 }
  0x36   : > { %p497_p0 = pneg %p496_p13 }
  0x38   : > { %249 = vmatpush.bf16.msra.mxu0 %v369_v19  ;;  %262 = vmatpush.bf16.msra.mxu1 %v373_v20  ;;  %p502_p7 = pnand %p501_p5, %p497_p0 }
  0x3b   : > { %382 = vmatmul.msk.bf16.vlgmr.msra.gmra.mxu0 %vm231_vm1, %v194_v21  ;;  %383 = vmatmul.msk.bf16.vlgmr.msra.gmra.mxu1 %vm231_vm1, %v194_v21 }
  0xa0   : > { %v204_v22 = vpop.permute.xlu0 %203 }
  0xb8   : > { %v251_v23 = vpop.f32.mrf.mxu0  ;;  %v264_v24 = vpop.f32.mrf.mxu1 }
  0xb9   : > { %v252_v25 = vadd.f32 %v251_v23, %v204_v22  ;;  %v265_v26 = vadd.f32 %v264_v24, %v204_v22 }
  0xbb   : > { %v268_v27 = vmax.f32 %v252_v25, 0.0  ;;  %v269_v28 = vmax.f32 %v265_v26, 0.0 }
  0xbd   : > { %270 = vst [vmem:[%s190_s20] sm:$0xff] %v268_v27 }
  0xbe   : > { %271 = vst [vmem:[%s190_s20 + $0x8] sm:$0xff] %v269_v28 }
  0xbf   : > { %505 = shalt.err (!%p502_p7)
}
  0xc0   : > { %399 = dma.vmem_to_hbm [thread:$0]  (%p616_p11), %s287_s26, 256, %s289_s25, %s273_s16   ;;  %v253_v29 = vpop.f32.mrf.mxu0  ;;  %v266_v30 = vpop.f32.mrf.mxu1 }
  0xc1 PF: > { %s300_s29 = sand.u32 1, %s532_s12   ;;  %p406_p8 = pnand %p361_p9, %p620_p12 }
  0xc2   : > { %s301_s22 = scalar_lea.sflag [#allocation4], %s300_s29 }
  0xc3   : > { %p407_p10 = pneg %p406_p8 }
  0xc5   : > { %527 = dma.done.wait (%p407_p10), %s301_s22, 256  }
  0xc6   : > { %529 = vsyncadd (%p407_p10), %s301_s22, 4294967040  ;;  %p16_p11 = scmp.ge.s32.totalorder %s595_s18, 4   ;;  %s704_s12 = smov %s536_s13 }
  0xc7   : > { %s705_s13 = smov %s540_s14  ;;  %s706_s14 = smov %s607_s21 }
  0xc8   : > { %s707_s15 = smov %s595_s18  ;;  %18 = sbr.rel (!%p16_p11) target bundleno = 5 (0x5), region = 77 }
  0xcd   :  { %307 = vsyncpa [#allocation3], 1 }
  0xce   :  { %309 = vsyncpa [#allocation3 + $0x1], 1 }
  0xcf   :  { %310 = vsyncpa [#allocation4], 1 }
  0xd0   :  { %312 = vsyncpa [#allocation4 + $0x1], 1 }

</bundles_post_ra>
